<compile_context>
chip_gen: v7x
topology: tpu7x:2x2x1
jax: 0.10.0
libtpu: 0.0.40
codegen_flags: <defaults>
</compile_context>

<pallas_src>
import functools

import jax
import jax.numpy as jnp
from jax.experimental import pallas as pl
from jax.experimental.pallas import tpu as pltpu


# ---------------------------------------------------------------------------
# Kernel 1: global average pool (tiled masked reduction over HW) + tiny MLP.
# Grid = (B, n_hw): B is "parallel", HW is the sequential ("arbitrary") axis.
# Output per batch: bias2[b] = xg[b] + b2_local  (global path pre-folded into
# the pass-2 second bias).
# ---------------------------------------------------------------------------
def _global_att_kernel(x_ref, w1g_ref, b1g_ref, w2g_ref, b2gl_ref,
                       bias2_ref, acc_ref, *, hw):
    k = pl.program_id(1)
    _, c, t_hw = x_ref.shape

    @pl.when(k == 0)
    def _():
        acc_ref[...] = jnp.zeros_like(acc_ref)

    # Mask padded tail columns of a ragged last block before the partial sum.
    col = jax.lax.broadcasted_iota(jnp.int32, (c, t_hw), 1) + k * t_hw
    xb = jnp.where(col < hw, x_ref[0], 0.0)                        # (C, t_hw)
    acc_ref[...] += jnp.sum(xb, axis=1, keepdims=True)             # (C, 1)

    @pl.when(k == pl.num_programs(1) - 1)
    def _():
        pooled = acc_ref[...] * (1.0 / hw)                         # (C, 1) mean
        hg = jnp.maximum(
            jnp.dot(w1g_ref[...], pooled, preferred_element_type=jnp.float32)
            + b1g_ref[...], 0.0)                                   # (inter, 1)
        bias2_ref[0] = (jnp.dot(w2g_ref[...], hg,
                                preferred_element_type=jnp.float32)
                        + b2gl_ref[...])                           # (C, 1)


# ---------------------------------------------------------------------------
# Kernel 2: local 1x1-conv MLP + sigmoid gate, tiled over (B, HW-tiles).
# Every grid step is independent (global path precomputed) -> fully parallel.
# ---------------------------------------------------------------------------
def _gate_kernel(x_ref, bias2_ref, w1l_ref, b1l_ref, w2l_ref, o_ref):
    h = jnp.maximum(
        jnp.dot(w1l_ref[...], x_ref[0], preferred_element_type=jnp.float32)
        + b1l_ref[...], 0.0)                                       # (inter, t_hw)
    z = (jnp.dot(w2l_ref[...], h, preferred_element_type=jnp.float32)
         + bias2_ref[0])                                           # (C, t_hw); xg + b2l folded
    wei = 0.5 * jnp.tanh(0.5 * z) + 0.5                            # sigmoid, single EUP op/elem
    # Re-read the pipelined input buffer for the store (short live range).
    o_ref[0] = x_ref[0] * wei                                      # lane-dense store


# ---------------------------------------------------------------------------
# Helpers
# ---------------------------------------------------------------------------
def _fold_conv_bn(w, b, gamma, beta, mean, var, eps=1e-5):
    """Fold Conv2d(1x1, bias) + BatchNorm2d(running stats) into (Cout,Cin)+(Cout,)."""
    scale = gamma / jnp.sqrt(var + eps)                 # (Cout,)
    w_eff = w * scale[:, None]                          # (Cout, Cin)
    b_eff = (b - mean) * scale + beta                   # (Cout,)
    return w_eff.astype(jnp.float32), b_eff.astype(jnp.float32)


def _pick_hw_tile(hw, c, tile_bytes):
    """Lane-aligned HW tile sized by bytes (~tile_bytes per f32 x block)."""
    cap = max(128, (tile_bytes // (c * 4)) // 128 * 128)
    if hw <= cap:
        return hw, 1                      # single full-extent block
    return cap, pl.cdiv(hw, cap)          # ragged last block handled by masking


def _vmem_limit(c, inter, t_hw):
    """Explicit VMEM budget: double-buffered IO + resident weights + temp headroom."""
    io = 4 * c * t_hw * 4                         # 2x in + 2x out blocks
    temps = 4 * (c + inter) * t_hw * 4            # h / z / wei temporaries (generous)
    weights = (2 * c * inter + 4 * c + 2 * inter) * 4
    need = io + temps + weights + (2 << 20)       # + margin for Mosaic scratch
    return int(min(max(need, 8 << 20), 48 << 20))


# ---------------------------------------------------------------------------
# JAX wrapper
# ---------------------------------------------------------------------------
def ms_cam(x_nchw, params, *, tile_bytes=2 * 1024 * 1024):
    """x_nchw: (B, C, H, W) float32. Returns (B, C, H, W)."""
    B, C, H, W = x_nchw.shape
    HW = H * W
    x = x_nchw.reshape(B, C, HW)          # free view: C on sublanes, HW on lanes

    (w1l, b1l), (w2l, b2l), (w1g, b1g), (w2g, b2g) = params
    inter = w1l.shape[0]

    # Kernel-oriented parameter layouts (tiny, resident in VMEM).
    b1l_c = b1l.reshape(inter, 1)
    b1g_c = b1g.reshape(inter, 1)
    b2gl_c = (b2g + b2l).reshape(C, 1)    # global bias + local second bias folded

    t_hw, n_hw = _pick_hw_tile(HW, C, tile_bytes)
    vmem_limit = _vmem_limit(C, inter, t_hw)

    # ---- pass 1: per-batch global attention column bias2 = xg + b2l ---------
    bias2 = pl.pallas_call(
        functools.partial(_global_att_kernel, hw=HW),
        out_shape=jax.ShapeDtypeStruct((B, C, 1), jnp.float32),
        grid_spec=pltpu.PrefetchScalarGridSpec(
            num_scalar_prefetch=0,
            grid=(B, n_hw),
            in_specs=[
                pl.BlockSpec((1, C, t_hw), lambda b, k: (b, 0, k)),
                pl.BlockSpec((inter, C), lambda b, k: (0, 0)),
                pl.BlockSpec((inter, 1), lambda b, k: (0, 0)),
                pl.BlockSpec((C, inter), lambda b, k: (0, 0)),
                pl.BlockSpec((C, 1), lambda b, k: (0, 0)),
            ],
            out_specs=pl.BlockSpec((1, C, 1), lambda b, k: (b, 0, 0)),
            scratch_shapes=[pltpu.VMEM((C, 1), jnp.float32)],
        ),
        compiler_params=pltpu.CompilerParams(
            dimension_semantics=("parallel", "arbitrary"),
            vmem_limit_bytes=vmem_limit),
    )(x, w1g, b1g_c, w2g, b2gl_c)

    # ---- pass 2: local MLP + sigmoid gate, tiled over (B, HW) ---------------
    out = pl.pallas_call(
        _gate_kernel,
        out_shape=jax.ShapeDtypeStruct((B, C, HW), jnp.float32),
        grid_spec=pltpu.PrefetchScalarGridSpec(
            num_scalar_prefetch=0,
            grid=(B, n_hw),
            in_specs=[
                pl.BlockSpec((1, C, t_hw), lambda b, k: (b, 0, k)),
                pl.BlockSpec((1, C, 1), lambda b, k: (b, 0, 0)),
                pl.BlockSpec((inter, C), lambda b, k: (0, 0)),
                pl.BlockSpec((inter, 1), lambda b, k: (0, 0)),
                pl.BlockSpec((C, inter), lambda b, k: (0, 0)),
            ],
            out_specs=pl.BlockSpec((1, C, t_hw), lambda b, k: (b, 0, k)),
        ),
        compiler_params=pltpu.CompilerParams(
            dimension_semantics=("parallel", "parallel"),
            vmem_limit_bytes=vmem_limit),
    )(x, bias2, w1l, b1l_c, w2l)

    return out.reshape(B, C, H, W)


# ---------------------------------------------------------------------------
# Deterministic synthetic parameters (mirrors MS_CAM.__init__ shapes, BN folded)
# ---------------------------------------------------------------------------
def make_params(key, channels=64, r=4):
    inter = channels // r
    ks = jax.random.split(key, 4)

    def conv_bn(ki, cin, cout):
        k_w, k_b, k_g, k_be, k_m, k_v = jax.random.split(ki, 6)
        w = 0.1 * jax.random.normal(k_w, (cout, cin), jnp.float32)
        b = 0.1 * jax.random.normal(k_b, (cout,), jnp.float32)
        gamma = 1.0 + 0.1 * jax.random.normal(k_g, (cout,), jnp.float32)
        beta = 0.1 * jax.random.normal(k_be, (cout,), jnp.float32)
        mean = 0.1 * jax.random.normal(k_m, (cout,), jnp.float32)
        var = 1.0 + 0.1 * jnp.abs(jax.random.normal(k_v, (cout,), jnp.float32))
        return _fold_conv_bn(w, b, gamma, beta, mean, var)

    local_1 = conv_bn(ks[0], channels, inter)
    local_2 = conv_bn(ks[1], inter, channels)
    glob_1 = conv_bn(ks[2], channels, inter)
    glob_2 = conv_bn(ks[3], inter, channels)
    return (local_1, local_2, glob_1, glob_2)


# ---------------------------------------------------------------------------
# Pure-JAX reference (NCHW semantics, BN already folded)
# ---------------------------------------------------------------------------
def ms_cam_ref(x_nchw, params):
    (w1l, b1l), (w2l, b2l), (w1g, b1g), (w2g, b2g) = params
    B, C, H, W = x_nchw.shape
    xf = x_nchw.reshape(B, C, H * W)
    h = jnp.maximum(jnp.einsum('oc,bcs->bos', w1l, xf) + b1l[None, :, None], 0.0)
    xl = jnp.einsum('oc,bcs->bos', w2l, h) + b2l[None, :, None]
    pooled = xf.mean(axis=2)                                      # (B, C)
    hg = jnp.maximum(pooled @ w1g.T + b1g, 0.0)
    xg = hg @ w2g.T + b2g                                         # (B, C)
    wei = jax.nn.sigmoid(xl + xg[:, :, None])
    return (xf * wei).reshape(B, C, H, W)


if __name__ == "__main__":
    key = jax.random.PRNGKey(0)
    k_x1, k_x2, k_p = jax.random.split(key, 3)

    B, C = 2, 64                           # channels=64, r=4 (module defaults)
    params = make_params(k_p, channels=C, r=4)

    # Case 1: canonical small shape (HW=256) -> single full-extent block.
    x1 = jax.random.normal(k_x1, (B, C, 16, 16), jnp.float32)
    out1 = jax.block_until_ready(ms_cam(x1, params))
    ref1 = ms_cam_ref(x1, params)
    assert out1.shape == x1.shape
    assert jnp.allclose(out1, ref1, atol=1e-5, rtol=1e-5), "mismatch (case 1)"

    # Case 2: ragged HW (20*20=400) with a forced 128-lane tile -> exercises the
    # cdiv grid, multi-step pooled accumulation and padded-tail masking.
    x2 = jax.random.normal(k_x2, (B, C, 20, 20), jnp.float32)
    out2 = jax.block_until_ready(ms_cam(x2, params, tile_bytes=128 * C * 4))
    ref2 = ms_cam_ref(x2, params)
    assert out2.shape == x2.shape
    assert jnp.allclose(out2, ref2, atol=1e-5, rtol=1e-5), "mismatch (case 2)"

    print("KERNEL_OK")
</pallas_src>

<mosaic_0001>
module attributes {stable_mosaic.version = 11 : i64} {
  func.func @_global_att_kernel(%arg0: i32, %arg1: i32, %arg2: memref<1x64x256xf32, #tpu.memory_space<vmem>>, %arg3: memref<16x64xf32, #tpu.memory_space<vmem>>, %arg4: memref<16x1xf32, #tpu.memory_space<vmem>>, %arg5: memref<64x16xf32, #tpu.memory_space<vmem>>, %arg6: memref<64x1xf32, #tpu.memory_space<vmem>>, %arg7: memref<1x64x1xf32, #tpu.memory_space<vmem>>, %arg8: memref<64x1xf32, #tpu.memory_space<vmem>>) attributes {dimension_semantics = [#tpu.dimension_semantics<parallel>, #tpu.dimension_semantics<arbitrary>], iteration_bounds = array<i64: 2, 1>, scalar_prefetch = 0 : i64, scratch_operands = 1 : i64, tpu.core_type = #tpu.core_type<tc>, window_params = [{transform_indices = @transform_0, window_bounds = array<i64: 1, 64, 256>}, {pipeline_mode = #tpu.pipeline_mode<synchronous>, transform_indices = @transform_1, window_bounds = array<i64: 16, 64>}, {pipeline_mode = #tpu.pipeline_mode<synchronous>, transform_indices = @transform_2, window_bounds = array<i64: 16, 1>}, {pipeline_mode = #tpu.pipeline_mode<synchronous>, transform_indices = @transform_3, window_bounds = array<i64: 64, 16>}, {pipeline_mode = #tpu.pipeline_mode<synchronous>, transform_indices = @transform_4, window_bounds = array<i64: 64, 1>}, {transform_indices = @transform_5, window_bounds = array<i64: 1, 64, 1>}]} {
    %c0_i32 = arith.constant 0 : i32
    %0 = arith.cmpi eq, %arg1, %c0_i32 : i32
    %1 = arith.extui %0 : i1 to i32
    %c0_i32_0 = arith.constant 0 : i32
    %2 = arith.cmpi ne, %1, %c0_i32_0 : i32
    scf.if %2 {
      %cst_11 = arith.constant 0.000000e+00 : f32
      %21 = vector.broadcast %cst_11 : f32 to vector<64x1xf32>
      %c0_12 = arith.constant 0 : index
      %c0_13 = arith.constant 0 : index
      %22 = vector.load %arg8[%c0_12, %c0_13] : memref<64x1xf32, #tpu.memory_space<vmem>>, vector<64x1xf32>
      tpu.vector_store %arg8[%c0_12, %c0_13], %21 {strides = array<i32>} : memref<64x1xf32, #tpu.memory_space<vmem>>, vector<64x1xf32>,
    } else {
    }
    %3 = tpu.iota {dimensions = array<i32: 1>} : vector<64x256xi32>
    %c256_i32 = arith.constant 256 : i32
    %4 = arith.muli %arg1, %c256_i32 : i32
    %5 = vector.broadcast %4 : i32 to vector<64x256xi32>
    %6 = arith.addi %3, %5 : vector<64x256xi32>
    %c256_i32_1 = arith.constant 256 : i32
    %7 = vector.broadcast %c256_i32_1 : i32 to vector<64x256xi32>
    %8 = arith.cmpi slt, %6, %7 : vector<64x256xi32>
    %c0 = arith.constant 0 : index
    %c0_2 = arith.constant 0 : index
    %c0_3 = arith.constant 0 : index
    %9 = vector.load %arg2[%c0, %c0_2, %c0_3] : memref<1x64x256xf32, #tpu.memory_space<vmem>>, vector<1x64x256xf32>
    %10 = vector.shape_cast %9 : vector<1x64x256xf32> to vector<64x256xf32>
    %cst = arith.constant 0.000000e+00 : f32
    %11 = vector.broadcast %cst : f32 to vector<64x256xf32>
    %12 = arith.select %8, %10, %11 : vector<64x256xi1>, vector<64x256xf32>
    %c0_4 = arith.constant 0 : index
    %c0_5 = arith.constant 0 : index
    %13 = vector.load %arg8[%c0_4, %c0_5] : memref<64x1xf32, #tpu.memory_space<vmem>>, vector<64x1xf32>
    %cst_6 = arith.constant dense<0.000000e+00> : vector<64xf32>
    %14 = vector.multi_reduction <add>, %12, %cst_6 [1] : vector<64x256xf32> to vector<64xf32>
    %15 = vector.shape_cast %14 : vector<64xf32> to vector<64x1xf32>
    %16 = arith.addf %13, %15 : vector<64x1xf32>
    %c0_7 = arith.constant 0 : index
    %c0_8 = arith.constant 0 : index
    %17 = vector.load %arg8[%c0_7, %c0_8] : memref<64x1xf32, #tpu.memory_space<vmem>>, vector<64x1xf32>
    tpu.vector_store %arg8[%c0_7, %c0_8], %16 {strides = array<i32>} : memref<64x1xf32, #tpu.memory_space<vmem>>, vector<64x1xf32>,
    %c0_i32_9 = arith.constant 0 : i32
    %18 = arith.cmpi eq, %arg1, %c0_i32_9 : i32
    %19 = arith.extui %18 : i1 to i32
    %c0_i32_10 = arith.constant 0 : i32
    %20 = arith.cmpi ne, %19, %c0_i32_10 : i32
    scf.if %20 {
      %c0_11 = arith.constant 0 : index
      %c0_12 = arith.constant 0 : index
      %21 = vector.load %arg8[%c0_11, %c0_12] : memref<64x1xf32, #tpu.memory_space<vmem>>, vector<64x1xf32>
      %cst_13 = arith.constant 3.906250e-03 : f32
      %22 = vector.broadcast %cst_13 : f32 to vector<64x1xf32>
      %23 = arith.mulf %21, %22 : vector<64x1xf32>
      %c0_14 = arith.constant 0 : index
      %c0_15 = arith.constant 0 : index
      %24 = vector.load %arg3[%c0_14, %c0_15] : memref<16x64xf32, #tpu.memory_space<vmem>>, vector<16x64xf32>
      %cst_16 = arith.constant dense<0.000000e+00> : vector<16x1xf32>
      %25 = tpu.matmul %24, %23, %cst_16 {dimension_numbers = #tpu.dot_dimension_numbers<[1], [0], [0], [1], [0, 0, 1, 1], [], []>} : vector<16x64xf32>, vector<64x1xf32>, vector<16x1xf32> -> vector<16x1xf32>
      %c0_17 = arith.constant 0 : index
      %c0_18 = arith.constant 0 : index
      %26 = vector.load %arg4[%c0_17, %c0_18] : memref<16x1xf32, #tpu.memory_space<vmem>>, vector<16x1xf32>
      %27 = arith.addf %25, %26 : vector<16x1xf32>
      %cst_19 = arith.constant 0.000000e+00 : f32
      %28 = vector.broadcast %cst_19 : f32 to vector<16x1xf32>
      %29 = arith.maximumf %27, %28 : vector<16x1xf32>
      %c0_20 = arith.constant 0 : index
      %c0_21 = arith.constant 0 : index
      %30 = vector.load %arg5[%c0_20, %c0_21] : memref<64x16xf32, #tpu.memory_space<vmem>>, vector<64x16xf32>
      %cst_22 = arith.constant dense<0.000000e+00> : vector<64x1xf32>
      %31 = tpu.matmul %30, %29, %cst_22 {dimension_numbers = #tpu.dot_dimension_numbers<[1], [0], [0], [1], [0, 0, 1, 1], [], []>} : vector<64x16xf32>, vector<16x1xf32>, vector<64x1xf32> -> vector<64x1xf32>
      %c0_23 = arith.constant 0 : index
      %c0_24 = arith.constant 0 : index
      %32 = vector.load %arg6[%c0_23, %c0_24] : memref<64x1xf32, #tpu.memory_space<vmem>>, vector<64x1xf32>
      %33 = arith.addf %31, %32 : vector<64x1xf32>
      %c0_25 = arith.constant 0 : index
      %c0_26 = arith.constant 0 : index
      %c0_27 = arith.constant 0 : index
      %34 = vector.load %arg7[%c0_25, %c0_26, %c0_27] : memref<1x64x1xf32, #tpu.memory_space<vmem>>, vector<1x64x1xf32>
      %35 = vector.shape_cast %34 : vector<1x64x1xf32> to vector<64x1xf32>
      %36 = vector.shape_cast %33 : vector<64x1xf32> to vector<1x64x1xf32>
      tpu.vector_store %arg7[%c0_25, %c0_26, %c0_27], %36 {strides = array<i32>} : memref<1x64x1xf32, #tpu.memory_space<vmem>>, vector<1x64x1xf32>,
    } else {
    }
    return
  }
  func.func @transform_0(%arg0: i32, %arg1: i32) -> (i32, i32, i32) {
    %c0_i32 = arith.constant 0 : i32
    %c0_i32_0 = arith.constant 0 : i32
    return %arg0, %c0_i32, %arg1 : i32, i32, i32
  }
  func.func @transform_1(%arg0: i32, %arg1: i32) -> (i32, i32) {
    %c0_i32 = arith.constant 0 : i32
    %c0_i32_0 = arith.constant 0 : i32
    %c0_i32_1 = arith.constant 0 : i32
    return %c0_i32, %c0_i32_0 : i32, i32
  }
  func.func @transform_2(%arg0: i32, %arg1: i32) -> (i32, i32) {
    %c0_i32 = arith.constant 0 : i32
    %c0_i32_0 = arith.constant 0 : i32
    %c0_i32_1 = arith.constant 0 : i32
    return %c0_i32, %c0_i32_0 : i32, i32
  }
  func.func @transform_3(%arg0: i32, %arg1: i32) -> (i32, i32) {
    %c0_i32 = arith.constant 0 : i32
    %c0_i32_0 = arith.constant 0 : i32
    %c0_i32_1 = arith.constant 0 : i32
    return %c0_i32, %c0_i32_0 : i32, i32
  }
  func.func @transform_4(%arg0: i32, %arg1: i32) -> (i32, i32) {
    %c0_i32 = arith.constant 0 : i32
    %c0_i32_0 = arith.constant 0 : i32
    %c0_i32_1 = arith.constant 0 : i32
    return %c0_i32, %c0_i32_0 : i32, i32
  }
  func.func @transform_5(%arg0: i32, %arg1: i32) -> (i32, i32, i32) {
    %c0_i32 = arith.constant 0 : i32
    %c0_i32_0 = arith.constant 0 : i32
    %c0_i32_1 = arith.constant 0 : i32
    return %arg0, %c0_i32, %c0_i32_0 : i32, i32, i32
  }
}

</mosaic_0001>

<bundles_post_ra>
// kernel: tpu_custom_call.1
= control target key start
LH: loop header
LB: loop body
LE: loop exit
PB: predicated region body
PF: predicated region fallthrough
CT: control target
= control target key end

     0   :  { %10 = vsyncpa [#allocation4], 0  ;;  %s1214_s0 = inlined_call_operand.hbm [shape: f32[2,64,256], index: 0, kind: input, shape index: {}]   ;;  %s1215_s1 = inlined_call_operand.vmem [shape: f32[16,64], index: 1, kind: input, shape index: {}]   ;;  %s1216_s2 = inlined_call_operand.vmem [shape: f32[16,1], index: 2, kind: input, shape index: {}]   ;;  %s1217_s3 = inlined_call_operand.vmem [shape: f32[64,16], index: 3, kind: input, shape index: {}]   ;;  %s1218_s4 = inlined_call_operand.vmem [shape: f32[64,1], index: 4, kind: input, shape index: {}]   ;;  %s1219_s5 = inlined_call_operand.vmem [shape: f32[2,64,1], index: 5, kind: output, shape index: {}]  }
   0x1   :  { %12 = vsyncpa [#allocation4 + $0x1], 0  ;;  %s978_s18 = smov 0   ;;  %s980_s19 = smov 0  }
   0x2   :  { %s982_s20 = smov 0   ;;  %s984_s21 = smov 0  }
   0x3   :  { %s986_s22 = smov 0   ;;  %s988_s23 = smov 0  }
   0x4 LB: > { %s704_s24 = sadd.s32 4294967295, %s942_s23   ;;  %s30_s25 = sadd.s32 1, %s938_s22  ;;  %s942_s23 = sphi %s988_s23, %s18_s23   ;;  %s938_s22 = sphi %s986_s22, %s1227_s22   ;;  %s934_s21 = sphi %s984_s21, %s1226_s21   ;;  %s930_s20 = sphi %s982_s20, %s1225_s20   ;;  %s926_s19 = sphi %s980_s19, %s1224_s19   ;;  %s922_s18 = sphi %s978_s18, %s1223_s18  }
   0x5   : > { %p32_p0 = scmp.ge.s32.totalorder %s30_s25, 2  ;;  %s39_s26 = sadd.s32 1, %s930_s20 }
   0x6   : > { %p46_p1 = scmp.ne.s32.totalorder %s930_s20, %s926_s19  ;;  %p47_p2 = scmp.eq.s32.totalorder %s942_s23, 0 }
   0x7   : > { %s1229_s25 = smov (%p32_p0, %s30_s25), 0  ;;  %p52_p4 = scmp.ne.s32.totalorder %s926_s19, %s922_s18 }
   0x8   : > { %p1014_p3 = por %p47_p2, %p46_p1  ;;  %s34_s28 = ssub.s32 %s938_s22, %s1229_s25 }
   0x9   : > { %p53_p5 = scmp.eq.s32.totalorder %s704_s24, 0  ;;  %p37_p6 = scmp.eq.s32.totalorder %s34_s28, 0 }
   0xa   : > { %p810_p8 = scmp.lt.s32.totalorder %s942_s23, 2  ;;  %s198_s6 = sand.u32 1, %s930_s20  }
   0xb   : > { %p1021_p7 = por %p53_p5, %p52_p4  ;;  %s727_s7 = sshll.u32 %s938_s22, 11 }
   0xc   : > { %s1027_s30 = scalar_select %p37_p6, %s930_s20, %s39_s26  }
   0xd   : > { %s708_s8 = sshll.u32 %s198_s6, 7  ;;  %s1034_s11 = scalar_lea.hbm %s1214_s0, %s727_s7 }
   0xe   : > { %s202_s12 = scalar_lea.vmem [#allocation3], %s708_s8  ;;  %p1038_p9 = pnand %p810_p8, %p1014_p3 }
   0xf   : > { %s211_s13 = sshll.u32 %s202_s12, 4  ;;  %s1044_s15 = scalar_lea.sflag [#allocation4], %s198_s6  ;;  %s1042_s13 = int_to_ptr.vmem [resolvable:$true] %s211_s13 }
  0x10   : > { %s862_s16 = scalar_lea.hbm %s1034_s11, 2048  ;;  %p864_p11 = pneg %p1038_p9 }
  0x11   : > { %p863_p10 = scmp.ne.s32.totalorder %s1034_s11, %s862_s16  ;;  %s867_s24 = scalar_lea.hbm %s1214_s0, 4096 }
  0x12   : > { %p868_p0 = scmp.lt.u32.totalorder %s1034_s11, %s1214_s0  ;;  %p869_p1 = scmp.lt.u32.totalorder %s867_s24, %s862_s16 }
  0x13   : > { %p865_p12 = pnand %p864_p11, %p863_p10  ;;  %p871_p3 = scmp.lt.u32.totalorder %s862_s16, %s1034_s11 }
  0x14   : > { %p870_p2 = por %p869_p1, %p868_p0 }
  0x15   : > { %p866_p13 = pneg %p865_p12 }
  0x16   : > { %p872_p4 = por %p871_p3, %p870_p2 }
  0x18   : > { %p873_p5 = pnand %p872_p4, %p866_p13 }
  0x1a   : > { %876 = shalt.err (!%p873_p5)
}
  0x1b   : > { %s877_s28 = scalar_lea.vmem %s1042_s13, 2048  ;;  %s944_s6 = smov [#allocation3]  }
  0x1c   : > { %p878_p6 = scmp.ne.s32.totalorder %s1042_s13, %s877_s28  ;;  %s882_s7 = sshll.u32 %s944_s6, 4  ;;  %s883_s7 = int_to_ptr.vmem [resolvable:$false] %s882_s7 }
  0x1d   : > { %s884_s8 = scalar_lea.vmem %s883_s7, 4096  ;;  %p885_p12 = scmp.lt.s32.totalorder %s1042_s13, %s883_s7 }
  0x1e   : > { %p880_p8 = pnand %p878_p6, %p864_p11  ;;  %p886_p0 = scmp.lt.s32.totalorder %s884_s8, %s877_s28 }
  0x20   : > { %p881_p10 = pneg %p880_p8  ;;  %p887_p1 = por %p886_p0, %p885_p12 }
  0x22   : > { %p888_p2 = pnand %p887_p1, %p881_p10 }
  0x24   : > { %891 = shalt.err (!%p888_p2)
}
  0x25   : > { %s945_s9 = smov 256   ;;  %s946_s10 = smov 16  }
  0x26   : > { %809 = dma.hbm_to_vmem [thread:$0]  (!%p1038_p9), %s1034_s11, 2048, %s1042_s13, %s1044_s15, %s945_s9, %s945_s9, %s946_s10  }
  0x27   : > { %p711_p11 = scmp.ge.s32.totalorder %s942_s23, 1  ;;  %p219_p13 = scmp.lt.s32.totalorder %s942_s23, 3 }
  0x29   : > { %p220_p3 = pnand %p711_p11, %p219_p13 }
  0x2a   : > { %s225_s12 = sand.u32 (!%p220_p3), 1, %s926_s19  }
  0x2b   : > { %223 = sbr.rel (%p220_p3) target bundleno = 682 (0x2aa), region = 40  ;;  %s712_s16 = sshll.u32 (!%p220_p3), %s225_s12, 7 }
  0x2c   : > { %s226_s17 = scalar_lea.sflag (!%p220_p3), [#allocation4], %s225_s12  ;;  %s1075_s18 = scalar_lea.vmem (!%p220_p3), [#allocation3], %s712_s16 }
  0x32   : > { %917 = dma.done.wait (%p1021_p7), %s226_s17, 2048  }
  0x33   : > { %919 = vsyncadd (%p1021_p7), %s226_s17, 4294965248  ;;  %vm266_vm0 = vcmask 7168   ;;  %v947_v0 = vmov 0.0   ;;  %v288_v1 = vld [vmem:[%s1075_s18 + $0x20] sm:$0xff]  ;;  %v289_v2 = vld [vmem:[%s1075_s18 + $0x28] sm:$0xff]  ;;  %vm388_vm1 = vcmask 523264  }
  0x34   : > { %269 = vst.msk [vmem:[#allocation2 + $0x10] sm:$0xff] %vm266_vm0, %v947_v0  ;;  %267 = vst.msk [vmem:[#allocation2] sm:$0xff] %vm266_vm0, %v947_v0  ;;  %v284_v3 = vld [vmem:[%s1075_s18] sm:$0xff]  ;;  %v330_v4 = vadd.f32 %v289_v2, %v288_v1  ;;  %v285_v5 = vld [vmem:[%s1075_s18 + $0x8] sm:$0xff]  ;;  %vm488_vm2 = vcmask 130048   ;;  %p257_p7 = scmp.lt.s32.totalorder %s934_s21, 1 }
  0x35   : > { %268 = vst.msk [vmem:[#allocation2 + $0x8] sm:$0xff] %vm266_vm0, %v947_v0  ;;  %270 = vst.msk [vmem:[#allocation2 + $0x18] sm:$0xff] %vm266_vm0, %v947_v0  ;;  %v290_v6 = vld [vmem:[%s1075_s18 + $0x30] sm:$0xff]  ;;  %v291_v7 = vld [vmem:[%s1075_s18 + $0x38] sm:$0xff]  ;;  %v324_v8 = vadd.f32 %v285_v5, %v284_v3 }
  0x36   : > { %271 = vst.msk [vmem:[#allocation2 + $0x20] sm:$0xff] %vm266_vm0, %v947_v0  ;;  %272 = vst.msk [vmem:[#allocation2 + $0x28] sm:$0xff] %vm266_vm0, %v947_v0  ;;  %v286_v9 = vld [vmem:[%s1075_s18 + $0x10] sm:$0xff]  ;;  %v287_v10 = vld [vmem:[%s1075_s18 + $0x18] sm:$0xff]  ;;  %331 = vadd.xlane.f32.xlu1 %v330_v4  ;;  %v333_v11 = vadd.f32 %v291_v7, %v290_v6  ;;  %s1231_s21 = smov (!%p257_p7, %s934_s21), 1 }
  0x37   : > { %273 = vst.msk [vmem:[#allocation2 + $0x30] sm:$0xff] %vm266_vm0, %v947_v0  ;;  %274 = vst.msk [vmem:[#allocation2 + $0x38] sm:$0xff] %vm266_vm0, %v947_v0  ;;  %325 = vadd.xlane.f32.xlu0 %v324_v8  ;;  %v327_v12 = vadd.f32 %v287_v10, %v286_v9  ;;  %v294_v13 = vld [vmem:[%s1075_s18 + $0x50] sm:$0xff]  ;;  %v295_v14 = vld [vmem:[%s1075_s18 + $0x58] sm:$0xff]  ;;  %s728_s26 = sshll.u32 %s1231_s21, 6 }
  0x38   : > { %v292_v15 = vld [vmem:[%s1075_s18 + $0x40] sm:$0xff]  ;;  %v293_v16 = vld [vmem:[%s1075_s18 + $0x48] sm:$0xff]  ;;  %v339_v17 = vadd.f32 %v295_v14, %v294_v13  ;;  %v298_v19 = vld [vmem:[%s1075_s18 + $0x70] sm:$0xff]  ;;  %s261_s10 = scalar_lea.vmem %s1219_s5, %s728_s26 }
  0x39   : > { %v336_v18 = vadd.f32 %v293_v16, %v292_v15  ;;  %v299_v20 = vld [vmem:[%s1075_s18 + $0x78] sm:$0xff]  ;;  %v296_v21 = vld [vmem:[%s1075_s18 + $0x60] sm:$0xff]  ;;  %v297_v22 = vld [vmem:[%s1075_s18 + $0x68] sm:$0xff] }
  0x3a   : > { %334 = vadd.xlane.f32.xlu1 %v333_v11  ;;  %v345_v23 = vadd.f32 %v299_v20, %v298_v19  ;;  %v342_v24 = vadd.f32 %v297_v22, %v296_v21  ;;  %v384_v25 = vld [vmem:[%s1215_s1] sm:$0xff]  ;;  %v385_v6 = vld [vmem:[%s1215_s1 + $0x8] sm:$0xff]  ;;  %v475_v19 = vld [vmem:[%s1217_s3 + $0x18] sm:$0xff] }
  0x3b   : > { %328 = vadd.xlane.f32.xlu0 %v327_v12  ;;  %765 = vmatprep.mubr.msk.f32.mxu0 %vm388_vm1, %v384_v25  ;;  %v318_v26 = vld [vmem:[#allocation2 + $0x10] sm:$0xff]  ;;  %v316_v27 = vld [vmem:[#allocation2] sm:$0xff]  ;;  %v387_v8 = vld [vmem:[%s1216_s2 + $0x8] sm:$0xff] }
  0x3c   : > { %v319_v32 = vld [vmem:[#allocation2 + $0x18] sm:$0xff]  ;;  %v317_v33 = vld [vmem:[#allocation2 + $0x8] sm:$0xff]  ;;  %v472_v7 = vld [vmem:[%s1217_s3] sm:$0xff] }
  0x3d   : > { %v321_v38 = vld [vmem:[#allocation2 + $0x28] sm:$0xff]  ;;  %v320_v39 = vld [vmem:[#allocation2 + $0x20] sm:$0xff]  ;;  %772 = vmatprep.mubr.msk.f32.mxu1 %vm488_vm2, %v472_v7  ;;  %v478_v22 = vld [vmem:[%s1217_s3 + $0x30] sm:$0xff] }
  0x3e   : > { %340 = vadd.xlane.f32.xlu1 %v339_v17  ;;  %v323_v44 = vld [vmem:[#allocation2 + $0x38] sm:$0xff]  ;;  %v322_v45 = vld [vmem:[#allocation2 + $0x30] sm:$0xff]  ;;  %v386_v9 = vld [vmem:[%s1216_s2] sm:$0xff] }
  0x3f   : > { %337 = vadd.xlane.f32.xlu0 %v336_v18  ;;  %v473_v17 = vld [vmem:[%s1217_s3 + $0x8] sm:$0xff]  ;;  %v474_v18 = vld [vmem:[%s1217_s3 + $0x10] sm:$0xff]  ;;  %v476_v20 = vld [vmem:[%s1217_s3 + $0x20] sm:$0xff] }
  0x40   : > { %v477_v21 = vld [vmem:[%s1217_s3 + $0x28] sm:$0xff]  ;;  %v480_v25 = vld [vmem:[%s1218_s4] sm:$0xff] }
  0x42   : > { %346 = vadd.xlane.f32.xlu1 %v345_v23  ;;  %v479_v23 = vld [vmem:[%s1217_s3 + $0x38] sm:$0xff] }
  0x43   : > { %343 = vadd.xlane.f32.xlu0 %v342_v24  ;;  %v481_v24 = vld [vmem:[%s1218_s4 + $0x8] sm:$0xff] }
  0xc3   : > { %v332_v28 = vpop.xlane.xlu1 %331 }
  0xc4   : > { %v350_v29 = vadd.f32 %v332_v28, %v318_v26  ;;  %v326_v30 = vpop.xlane.xlu0 %325 }
  0xc5   : > { %v348_v31 = vadd.f32 %v326_v30, %v316_v27  ;;  %v483_v30 = vld [vmem:[%s1218_s4 + $0x18] sm:$0xff] }
  0xc6   : > { %359 = vst.msk [vmem:[#allocation2 + $0x10] sm:$0xff] %vm266_vm0, %v350_v29 }
  0xc7   : > { %357 = vst.msk [vmem:[#allocation2] sm:$0xff] %vm266_vm0, %v348_v31  ;;  %v335_v34 = vpop.xlane.xlu1 %334  ;;  %v482_v31 = vld [vmem:[%s1218_s4 + $0x10] sm:$0xff] }
  0xc8   : > { %v351_v35 = vadd.f32 %v335_v34, %v319_v32  ;;  %v329_v36 = vpop.xlane.xlu0 %328 }
  0xc9   : > { %v349_v37 = vadd.f32 %v329_v36, %v317_v33  ;;  %v485_v36 = vld [vmem:[%s1218_s4 + $0x28] sm:$0xff] }
  0xca   : > { %360 = vst.msk [vmem:[#allocation2 + $0x18] sm:$0xff] %vm266_vm0, %v351_v35 }
  0xcb   : > { %358 = vst.msk [vmem:[#allocation2 + $0x8] sm:$0xff] %vm266_vm0, %v349_v37  ;;  %v341_v40 = vpop.xlane.xlu1 %340  ;;  %v484_v37 = vld [vmem:[%s1218_s4 + $0x20] sm:$0xff] }
  0xcc   : > { %v353_v41 = vadd.f32 %v341_v40, %v321_v38  ;;  %v338_v42 = vpop.xlane.xlu0 %337 }
  0xcd   : > { %v352_v43 = vadd.f32 %v338_v42, %v320_v39  ;;  %v370_v50 = vld [vmem:[#allocation2 + $0x10] sm:$0xff]  ;;  %v487_v42 = vld [vmem:[%s1218_s4 + $0x38] sm:$0xff] }
  0xce   : > { %362 = vst.msk [vmem:[#allocation2 + $0x28] sm:$0xff] %vm266_vm0, %v353_v41  ;;  %v368_v49 = vld [vmem:[#allocation2] sm:$0xff]  ;;  %v378_v56 = vmul.f32 0.00390625, %v370_v50 }
  0xcf   : > { %361 = vst.msk [vmem:[#allocation2 + $0x20] sm:$0xff] %vm266_vm0, %v352_v43  ;;  %v347_v46 = vpop.xlane.xlu1 %346  ;;  %v376_v54 = vmul.f32 0.00390625, %v368_v49  ;;  %v486_v43 = vld [vmem:[%s1218_s4 + $0x30] sm:$0xff] }
  0xd0   : > { %v355_v47 = vadd.f32 %v347_v46, %v323_v44  ;;  %v344_v48 = vpop.xlane.xlu0 %343 }
  0xd1   : > { %v354_v51 = vadd.f32 %v344_v48, %v322_v45  ;;  %v371_v52 = vld [vmem:[#allocation2 + $0x18] sm:$0xff] }
  0xd2   : > { %364 = vst.msk [vmem:[#allocation2 + $0x38] sm:$0xff] %vm266_vm0, %v355_v47  ;;  %v369_v53 = vld [vmem:[#allocation2 + $0x8] sm:$0xff]  ;;  %v379_v57 = vmul.f32 0.00390625, %v371_v52 }
  0xd3   : > { %363 = vst.msk [vmem:[#allocation2 + $0x30] sm:$0xff] %vm266_vm0, %v354_v51  ;;  %v377_v55 = vmul.f32 0.00390625, %v369_v53 }
  0xd4   : > { %v788_v62 = vpack.c.bf16 %v379_v57, %v378_v56 }
  0xd5   : > { %v784_v58 = vpack.c.bf16 %v377_v55, %v376_v54  ;;  %v373_v59 = vld [vmem:[#allocation2 + $0x28] sm:$0xff] }
  0xd6   : > { %v372_v60 = vld [vmem:[#allocation2 + $0x20] sm:$0xff]  ;;  %v381_v61 = vmul.f32 0.00390625, %v373_v59 }
  0xd7   : > { %785 = vmatprep.subr.bf16.mxu0 %v784_v58  ;;  %v380_v63 = vmul.f32 0.00390625, %v372_v60 }
  0xd8   : > { %787 = vmatpush3.bf16.msra.mxu0 %v784_v58 }
  0xd9   : > { %789 = vmatprep.subr.bf16.mxu0 %v788_v62  ;;  %v792_v0 = vpack.c.bf16 %v381_v61, %v380_v63  ;;  %v375_v1 = vld [vmem:[#allocation2 + $0x38] sm:$0xff] }
  0xda   : > { %v374_v2 = vld [vmem:[#allocation2 + $0x30] sm:$0xff]  ;;  %v383_v3 = vmul.f32 0.00390625, %v375_v1 }
  0xdb   : > { %v382_v4 = vmul.f32 0.00390625, %v374_v2 }
  0xdc   : > { %791 = vmatpush3.bf16.msra.mxu0 %v788_v62 }
  0xdd   : > { %793 = vmatprep.subr.bf16.mxu0 %v792_v0  ;;  %v796_v5 = vpack.c.bf16 %v383_v3, %v382_v4 }
  0xe0   : > { %795 = vmatpush3.bf16.msra.mxu0 %v792_v0 }
  0xe1   : > { %797 = vmatprep.subr.bf16.mxu0 %v796_v5 }
  0xe4   : > { %799 = vmatpush3.bf16.msra.mxu0 %v796_v5 }
  0xe7   : > { %766 = vmatmul.mubr.msk.f32.vlgmr.msra.gmra.mrb[0].mxu0 %vm388_vm1, %v385_v6 }
 0x1ba   : > { %v767_v10 = vpop.f32.mrb[0].mxu0 }
 0x1bb   : > { %v467_v11 = vadd.f32 %v767_v10, %v387_v8  ;;  %v461_v12 = vpop.f32.mrb[1].mxu0 }
 0x1bc   : > { %v462_v13 = vadd.f32 %v461_v12, %v386_v9 }
 0x1bd   : > { %v471_v14 = vmax.f32 %v467_v11, 0.0 }
 0x1be   : > { %v470_v15 = vmax.f32 %v462_v13, 0.0 }
 0x1c0   : > { %v800_v16 = vpack.c.bf16 %v471_v14, %v470_v15 }
 0x1c2   : > { %801 = vmatprep.subr.bf16.mxu1 %v800_v16 }
 0x1c3   : > { %803 = vmatpush3.bf16.msra.mxu1 %v800_v16 }
 0x1c6   : > { %773 = vmatmul.mubr.msk.f32.vlgmr.msra.gmra.mrb[0].mxu1 %vm488_vm2, %v473_v17 }
 0x1c7   : > { %775 = vmatprep.mubr.msk.f32.mxu1 %vm488_vm2, %v474_v18 }
 0x1ca   : > { %776 = vmatmul.mubr.msk.f32.gmra.mrb[2].mxu1 %vm488_vm2, %v475_v19 }
 0x1cb   : > { %778 = vmatprep.mubr.msk.f32.mxu1 %vm488_vm2, %v476_v20 }
 0x1ce   : > { %779 = vmatmul.mubr.msk.f32.gmra.mrb[4].mxu1 %vm488_vm2, %v477_v21 }
 0x1cf   : > { %781 = vmatprep.mubr.msk.f32.mxu1 %vm488_vm2, %v478_v22 }
 0x1d2   : > { %782 = vmatmul.mubr.msk.f32.gmra.mrb[6].mxu1 %vm488_vm2, %v479_v23 }
 0x299   : > { %v774_v26 = vpop.f32.mrb[0].mxu1 }
 0x29a   : > { %v585_v27 = vadd.f32 %v774_v26, %v481_v24  ;;  %v579_v28 = vpop.f32.mrb[1].mxu1 }
 0x29b   : > { %v580_v29 = vadd.f32 %v579_v28, %v480_v25 }
 0x29c   : > { %619 = vst.msk [vmem:[%s261_s10 + $0x8] sm:$0xff] %vm266_vm0, %v585_v27 }
 0x29d   : > { %618 = vst.msk [vmem:[%s261_s10] sm:$0xff] %vm266_vm0, %v580_v29  ;;  %v777_v32 = vpop.f32.mrb[2].mxu1 }
 0x29e   : > { %v595_v33 = vadd.f32 %v777_v32, %v483_v30  ;;  %v589_v34 = vpop.f32.mrb[3].mxu1 }
 0x29f   : > { %v590_v35 = vadd.f32 %v589_v34, %v482_v31 }
 0x2a0   : > { %621 = vst.msk [vmem:[%s261_s10 + $0x18] sm:$0xff] %vm266_vm0, %v595_v33 }
 0x2a1   : > { %620 = vst.msk [vmem:[%s261_s10 + $0x10] sm:$0xff] %vm266_vm0, %v590_v35  ;;  %v780_v38 = vpop.f32.mrb[4].mxu1 }
 0x2a2   : > { %v605_v39 = vadd.f32 %v780_v38, %v485_v36  ;;  %v599_v40 = vpop.f32.mrb[5].mxu1 }
 0x2a3   : > { %v600_v41 = vadd.f32 %v599_v40, %v484_v37 }
 0x2a4   : > { %623 = vst.msk [vmem:[%s261_s10 + $0x28] sm:$0xff] %vm266_vm0, %v605_v39 }
 0x2a5   : > { %622 = vst.msk [vmem:[%s261_s10 + $0x20] sm:$0xff] %vm266_vm0, %v600_v41  ;;  %v783_v44 = vpop.f32.mrb[6].mxu1 }
 0x2a6   : > { %v615_v45 = vadd.f32 %v783_v44, %v487_v42  ;;  %v609_v46 = vpop.f32.mrb[7].mxu1 }
 0x2a7   : > { %v610_v47 = vadd.f32 %v609_v46, %v486_v43 }
 0x2a8   : > { %625 = vst.msk [vmem:[%s261_s10 + $0x38] sm:$0xff] %vm266_vm0, %v615_v45 }
 0x2a9   : > { %624 = vst.msk [vmem:[%s261_s10 + $0x30] sm:$0xff] %vm266_vm0, %v610_v47 }
 0x2aa PF: > { %s18_s23 = sadd.s32 1, %s942_s23   ;;  %s1223_s18 = smov %s926_s19 }
 0x2ab   : > { %p15_p9 = scmp.ge.s32.totalorder %s18_s23, 4   ;;  %s1224_s19 = smov %s930_s20 }
 0x2ac   : > { %s1225_s20 = smov %s1027_s30  ;;  %s1226_s21 = smov %s938_s22 }
 0x2ad   : > { %s1227_s22 = smov %s1229_s25  ;;  %17 = sbr.rel (!%p15_p9) target bundleno = 4 (0x4), region = 88 }
 0x2b4   :  { %647 = vsyncpa [#allocation4], 1 }
 0x2b5   :  { %649 = vsyncpa [#allocation4 + $0x1], 1 }

</bundles_post_ra>
